<compile_context>
chip_gen: v5e
topology: v5e:2x2
jax: 0.10.0
libtpu: 0.0.40
codegen_flags: <defaults>
</compile_context>

<pallas_src>
import numpy as np
import jax
import jax.numpy as jnp
from jax.experimental import pallas as pl
from jax.experimental.pallas import tpu as pltpu

_SQRT2 = np.float32(np.sqrt(2.0))


def _round_up(n, m):
    return ((n + m - 1) // m) * m


def _cdiv(a, b):
    return (a + b - 1) // b


def _pad2d(x, rows, cols):
    x = jnp.asarray(x, jnp.float32)
    r, c = x.shape
    return jnp.pad(x, ((0, rows - r), (0, cols - c)))


def _maybe_pad2d(x, rows, cols):
    """Pad only when needed (skip the extra HBM copy for already-aligned inputs)."""
    x = x.astype(jnp.float32)
    r, c = x.shape
    if r == rows and c == cols:
        return x
    return jnp.pad(x, ((0, rows - r), (0, cols - c)))


# ---------------------------------------------------------------------------
# Fused Pallas kernel: grid = (batch_blocks, num_layers)
# ---------------------------------------------------------------------------

def _make_mapping_kernel(*, z_dim, c_dim, embed_features, eps):
    has_z = z_dim > 0
    has_c = c_dim > 0
    assert has_z or has_c, "MappingNetwork needs z_dim > 0 or c_dim > 0"

    def kernel(*refs):
        i = 0
        z_ref = c_ref = we_ref = be_ref = w0z_ref = w0c_ref = None
        if has_z:
            z_ref = refs[i]; i += 1
        if has_c:
            c_ref, we_ref, be_ref = refs[i], refs[i + 1], refs[i + 2]; i += 3
        if has_z:
            w0z_ref = refs[i]; i += 1
        if has_c:
            w0c_ref = refs[i]; i += 1
        b_ref = refs[i]; i += 1          # (num_layers, F) all biases, gains folded
        wh_ref = refs[i]; i += 1         # (1, F, F) hidden weight for layer l (streamed)
        o_ref = refs[i]; i += 1          # (bt, F) output block
        h_ref = refs[i]                  # (bt, F) running activation (VMEM scratch)

        l = pl.program_id(1)
        f32 = jnp.float32
        bias = b_ref[pl.ds(l, 1), :]     # (1, F) layer-l bias (row 0 == fc0 bias)

        @pl.when(l == 0)
        def _():
            # pixel_norm(z), embed(c) + pixel_norm, fc0 (split matmul == concat), lrelu.
            acc = None
            if has_z:
                zx = z_ref[...].astype(f32)
                # Padded z columns are zero -> divide by the TRUE z_dim.
                zn = zx * jax.lax.rsqrt(
                    jnp.sum(zx * zx, axis=1, keepdims=True) * (1.0 / z_dim) + eps)
                acc = jnp.dot(zn, w0z_ref[...], preferred_element_type=f32)
            if has_c:
                cx = c_ref[...].astype(f32)
                y = jnp.dot(cx, we_ref[...], preferred_element_type=f32) + be_ref[...]
                yn = y * jax.lax.rsqrt(
                    jnp.sum(y * y, axis=1, keepdims=True) * (1.0 / embed_features) + eps)
                yc = jnp.dot(yn, w0c_ref[...], preferred_element_type=f32)
                acc = yc if acc is None else acc + yc
            h = acc + bias
            h_ref[...] = jnp.where(h >= 0.0, h, 0.2 * h) * _SQRT2

        @pl.when(l > 0)
        def _():
            # Hidden layer l: activation stays resident in VMEM; weight block for
            # layer l+1 is prefetched by the pipeline while this matmul runs.
            h = jnp.dot(h_ref[...], wh_ref[0], preferred_element_type=f32) + bias
            h_ref[...] = jnp.where(h >= 0.0, h, 0.2 * h) * _SQRT2

        @pl.when(l == pl.num_programs(1) - 1)
        def _():
            o_ref[...] = h_ref[...].astype(o_ref.dtype)

    return kernel


# ---------------------------------------------------------------------------
# Parameters (PyTorch-equivalent init) + one-time kernel-ready prep
# ---------------------------------------------------------------------------

def init_mapping_params(key, *, z_dim, c_dim, w_dim, num_layers=8,
                        embed_features=None, layer_features=None,
                        lr_multiplier=0.01):
    if embed_features is None:
        embed_features = w_dim
    if c_dim == 0:
        embed_features = 0
    if layer_features is None:
        layer_features = w_dim
    features_list = [z_dim + embed_features] + [layer_features] * (num_layers - 1) + [w_dim]

    params = {"features_list": features_list,
              "embed_features": embed_features,
              "lr_multiplier": lr_multiplier}

    keys = jax.random.split(key, num_layers + 1)
    if c_dim > 0:
        # embed layer: lr_multiplier = 1, bias_init = 0
        params["embed_w"] = jax.random.normal(keys[0], (embed_features, c_dim), jnp.float32)
        params["embed_b"] = jnp.zeros((embed_features,), jnp.float32)
    fcs = []
    for idx in range(num_layers):
        in_f = features_list[idx]
        out_f = features_list[idx + 1]
        # torch.randn([out, in]) / lr_multiplier ; bias = 0
        w = jax.random.normal(keys[idx + 1], (out_f, in_f), jnp.float32) / lr_multiplier
        b = jnp.zeros((out_f,), jnp.float32)
        fcs.append((w, b))
    params["fcs"] = fcs
    return params


def prepare_mapping_params(params, *, z_dim, c_dim):
    """One-time prep: fold gains, transpose to [in, out], pad feature axes to 128,
    split fc0's weight at the concat boundary, stack hidden weights into one
    [L-1, F, F] array, and merge all biases into one (num_layers, F) array."""
    num_layers = len(params["fcs"])
    assert num_layers >= 2, "kernel assumes num_layers >= 2 (module default is 8)"
    embed_features = params["embed_features"]
    features_list = params["features_list"]
    lr_mult = float(params["lr_multiplier"])

    pad = lambda n: max(_round_up(n, 128), 128)

    layer_features = features_list[1]
    w_dim = features_list[-1]
    F = max(pad(layer_features), pad(w_dim))   # uniform padded hidden/output width

    zp = pad(z_dim) if z_dim > 0 else 0
    cp = pad(c_dim) if c_dim > 0 else 0
    ep = pad(embed_features) if c_dim > 0 else 0

    prepped = {"z_dim": z_dim, "c_dim": c_dim, "embed_features": embed_features,
               "num_layers": num_layers, "w_dim": w_dim, "F": F,
               "z_pad": zp, "c_pad": cp, "e_pad": ep}

    if c_dim > 0:
        # embed: lr_mult = 1 -> weight_gain = 1/sqrt(c_dim), bias_gain = 1
        we = (jnp.asarray(params["embed_w"], jnp.float32)
              * np.float32(1.0 / np.sqrt(c_dim))).T                 # [c, e]
        prepped["we"] = _pad2d(we, cp, ep)
        prepped["be"] = _pad2d(jnp.asarray(params["embed_b"]).reshape(1, -1), 1, ep)

    # fc0: gain uses the FULL concat width (z_dim + embed_features); split weight.
    in0 = features_list[0]
    w0, _ = params["fcs"][0]
    w0t = (jnp.asarray(w0, jnp.float32) * np.float32(lr_mult / np.sqrt(in0))).T  # [in0, F_out]
    if z_dim > 0:
        prepped["w0z"] = _pad2d(w0t[:z_dim], zp, F)
    if c_dim > 0:
        prepped["w0c"] = _pad2d(w0t[z_dim:], ep, F)

    # All biases (gain pre-folded) merged into one (num_layers, F) block.
    bias_rows = []
    for idx in range(num_layers):
        _, b = params["fcs"][idx]
        bias_rows.append(_pad2d((jnp.asarray(b, jnp.float32) * np.float32(lr_mult)
                                 ).reshape(1, -1), 1, F))
    prepped["bias_all"] = jnp.concatenate(bias_rows, axis=0)

    # Hidden layers 1..num_layers-1 stacked into one [L-1, F, F] array (streamed).
    hidden = []
    for idx in range(1, num_layers):
        in_f = features_list[idx]
        w, _ = params["fcs"][idx]
        wt = (jnp.asarray(w, jnp.float32) * np.float32(lr_mult / np.sqrt(in_f))).T
        hidden.append(_pad2d(wt, F, F)[None])
    prepped["hidden_w"] = jnp.concatenate(hidden, axis=0)
    return prepped


# ---------------------------------------------------------------------------
# Forward: ONE pallas_call, grid = (batch_blocks, num_layers)
# ---------------------------------------------------------------------------

def _choose_batch_tile(B, batch_tile):
    """Batch tile: multiple of 8, padding waste <= 7 rows per block, and >= 2
    batch grid steps when B allows it (so v7x's second TensorCore gets work)."""
    cap = max(8, _round_up(min(batch_tile, B), 8))
    if B > 8:
        cap = min(cap, _round_up(_cdiv(B, 2), 8))
    nb = _cdiv(B, cap)
    bt = _round_up(_cdiv(B, nb), 8)
    return bt, nb


def mapping_forward(prepped, z, c, *, num_ws, batch_tile=512, eps=1e-8):
    z_dim, c_dim = prepped["z_dim"], prepped["c_dim"]
    F = prepped["F"]
    num_layers = prepped["num_layers"]
    B = z.shape[0] if z_dim > 0 else c.shape[0]

    bt, nb = _choose_batch_tile(B, batch_tile)
    B_pad = nb * bt

    inputs, in_specs = [], []

    def batch_spec(feat_pad):
        return pl.BlockSpec((bt, feat_pad), lambda i, l: (i, 0))

    def full_spec(shape):
        zeros = (0,) * len(shape)
        return pl.BlockSpec(tuple(shape), lambda i, l: zeros)

    if z_dim > 0:
        inputs.append(_maybe_pad2d(z, B_pad, prepped["z_pad"]))
        in_specs.append(batch_spec(prepped["z_pad"]))
    if c_dim > 0:
        inputs.append(_maybe_pad2d(c, B_pad, prepped["c_pad"]))
        in_specs.append(batch_spec(prepped["c_pad"]))
        inputs += [prepped["we"], prepped["be"]]
        in_specs += [full_spec(prepped["we"].shape), full_spec(prepped["be"].shape)]
    if z_dim > 0:
        inputs.append(prepped["w0z"]); in_specs.append(full_spec(prepped["w0z"].shape))
    if c_dim > 0:
        inputs.append(prepped["w0c"]); in_specs.append(full_spec(prepped["w0c"].shape))
    inputs.append(prepped["bias_all"])
    in_specs.append(full_spec(prepped["bias_all"].shape))

    # Hidden weights: one [F, F] layer slice per inner grid step.  The pipeline
    # double-buffers this block, so layer l+1's weight DMA overlaps layer l's
    # matmul.  At l == 0 (and l == 1) the index maps to slice 0, so the first
    # hidden weight is prefetched while the fc0/embed/pixel-norm step computes.
    inputs.append(prepped["hidden_w"])
    in_specs.append(pl.BlockSpec((1, F, F),
                                 lambda i, l: (jnp.maximum(l - 1, 0), 0, 0)))

    # Explicit scoped-VMEM limit from the actual (double-buffered) block footprint.
    def _blk_bytes(shape):
        n = 1
        for d in shape:
            n *= int(d)
        return n * 4

    block_shapes = []
    if z_dim > 0:
        block_shapes.append((bt, prepped["z_pad"]))
    if c_dim > 0:
        block_shapes += [(bt, prepped["c_pad"]),
                         prepped["we"].shape, prepped["be"].shape]
    if z_dim > 0:
        block_shapes.append(prepped["w0z"].shape)
    if c_dim > 0:
        block_shapes.append(prepped["w0c"].shape)
    block_shapes += [prepped["bias_all"].shape, (1, F, F), (bt, F)]  # last = output
    footprint = 2 * sum(_blk_bytes(s) for s in block_shapes) + _blk_bytes((bt, F))
    vmem_limit = int(min(max(32 << 20, footprint + (4 << 20)), 64 << 20))

    # Cost estimate so XLA can schedule surrounding pad/slice/broadcast around us.
    flops = 0
    if z_dim > 0:
        flops += 2 * B_pad * prepped["z_pad"] * F
    if c_dim > 0:
        flops += 2 * B_pad * (prepped["c_pad"] * prepped["e_pad"]
                              + prepped["e_pad"] * F)
    flops += 2 * B_pad * (num_layers - 1) * F * F
    bytes_accessed = (sum(int(np.prod(x.shape)) for x in inputs) + B_pad * F) * 4
    cost = pl.CostEstimate(flops=int(flops), transcendentals=int(2 * B_pad),
                           bytes_accessed=int(bytes_accessed))

    kernel = _make_mapping_kernel(z_dim=z_dim, c_dim=c_dim,
                                  embed_features=prepped["embed_features"], eps=eps)

    out = pl.pallas_call(
        kernel,
        out_shape=jax.ShapeDtypeStruct((B_pad, F), jnp.float32),
        grid=(nb, num_layers),
        in_specs=in_specs,
        out_specs=pl.BlockSpec((bt, F), lambda i, l: (i, 0)),
        scratch_shapes=[pltpu.VMEM((bt, F), jnp.float32)],
        compiler_params=pltpu.CompilerParams(
            dimension_semantics=("parallel", "arbitrary"),
            vmem_limit_bytes=vmem_limit),
        cost_estimate=cost,
    )(*inputs)

    w_out = out[:B, :prepped["w_dim"]]
    if num_ws is not None:
        # Broadcast kept outside the kernel (lazy; avoids num_ws x output stores).
        w_out = jnp.broadcast_to(w_out[:, None, :], (B, num_ws, prepped["w_dim"]))
    # truncation_psi == 1 (default) -> no truncation; update_emas=False -> no w_avg EMA.
    # TODO(synk): resnetcond_* path (concat cond['resnet_feats'] onto c) not implemented.
    return w_out


# ---------------------------------------------------------------------------
# Pure-JAX reference (uses RAW params, matching the PyTorch math exactly)
# ---------------------------------------------------------------------------

def _ref_pixel_norm(x, eps=1e-8):
    return x * jax.lax.rsqrt(jnp.mean(x * x, axis=1, keepdims=True) + eps)


def _ref_fc(x, w, b, activation, lr_multiplier):
    wg = lr_multiplier / np.sqrt(w.shape[1])
    y = x @ (w * wg).T + b * lr_multiplier
    if activation == "lrelu":
        y = jnp.where(y >= 0, y, 0.2 * y) * np.sqrt(2.0)
    return y


def _ref_forward(params, z, c, *, z_dim, c_dim, num_ws, num_layers=8):
    x = None
    if z_dim > 0:
        x = _ref_pixel_norm(z.astype(jnp.float32))
    if c_dim > 0:
        y = _ref_pixel_norm(_ref_fc(c.astype(jnp.float32), params["embed_w"],
                                    params["embed_b"], "linear", 1.0))
        x = jnp.concatenate([x, y], axis=1) if x is not None else y
    for idx in range(num_layers):
        w, b = params["fcs"][idx]
        x = _ref_fc(x, w, b, "lrelu", params["lr_multiplier"])
    return jnp.broadcast_to(x[:, None, :], (x.shape[0], num_ws, x.shape[1]))


# ---------------------------------------------------------------------------

if __name__ == "__main__":
    key = jax.random.PRNGKey(0)
    k1, k2, kz, kc, kz2 = jax.random.split(key, 5)
    num_layers = 8

    # Case 1: z + c conditioning (small, module-consistent shapes).
    B, z_dim, c_dim, w_dim, num_ws = 8, 32, 16, 32, 4
    params = init_mapping_params(k1, z_dim=z_dim, c_dim=c_dim, w_dim=w_dim,
                                 num_layers=num_layers, lr_multiplier=0.01)
    prepped = prepare_mapping_params(params, z_dim=z_dim, c_dim=c_dim)
    z = jax.random.normal(kz, (B, z_dim), jnp.float32)
    c = jax.random.normal(kc, (B, c_dim), jnp.float32)

    out = jax.block_until_ready(mapping_forward(prepped, z, c, num_ws=num_ws))
    assert out.shape == (B, num_ws, w_dim), out.shape
    ref = _ref_forward(params, z, c, z_dim=z_dim, c_dim=c_dim,
                       num_ws=num_ws, num_layers=num_layers)
    np.testing.assert_allclose(np.asarray(out), np.asarray(ref), rtol=5e-5, atol=5e-5)

    # Case 2: z-only conditioning, batch not a multiple of the tile
    # (exercises >= 2 parallel batch grid steps + row padding).
    B2, z_dim2, w_dim2, num_ws2 = 20, 32, 32, 3
    params2 = init_mapping_params(k2, z_dim=z_dim2, c_dim=0, w_dim=w_dim2,
                                  num_layers=num_layers, lr_multiplier=0.01)
    prepped2 = prepare_mapping_params(params2, z_dim=z_dim2, c_dim=0)
    z2 = jax.random.normal(kz2, (B2, z_dim2), jnp.float32)

    out2 = jax.block_until_ready(mapping_forward(prepped2, z2, None, num_ws=num_ws2))
    assert out2.shape == (B2, num_ws2, w_dim2), out2.shape
    ref2 = _ref_forward(params2, z2, None, z_dim=z_dim2, c_dim=0,
                        num_ws=num_ws2, num_layers=num_layers)
    np.testing.assert_allclose(np.asarray(out2), np.asarray(ref2), rtol=5e-5, atol=5e-5)

    print("KERNEL_OK")
</pallas_src>

<mosaic_0001>
module attributes {stable_mosaic.version = 11 : i64} {
  func.func @kernel(%arg0: i32, %arg1: i32, %arg2: memref<8x128xf32, #tpu.memory_space<vmem>>, %arg3: memref<8x128xf32, #tpu.memory_space<vmem>>, %arg4: memref<128x128xf32, #tpu.memory_space<vmem>>, %arg5: memref<1x128xf32, #tpu.memory_space<vmem>>, %arg6: memref<128x128xf32, #tpu.memory_space<vmem>>, %arg7: memref<128x128xf32, #tpu.memory_space<vmem>>, %arg8: memref<8x128xf32, #tpu.memory_space<vmem>>, %arg9: memref<1x128x128xf32, #tpu.memory_space<vmem>>, %arg10: memref<8x128xf32, #tpu.memory_space<vmem>>, %arg11: memref<8x128xf32, #tpu.memory_space<vmem>>) attributes {dimension_semantics = [#tpu.dimension_semantics<parallel>, #tpu.dimension_semantics<arbitrary>], iteration_bounds = array<i64: 1, 8>, scalar_prefetch = 0 : i64, scratch_operands = 1 : i64, tpu.core_type = #tpu.core_type<tc>, window_params = [{transform_indices = @transform_0, window_bounds = array<i64: 8, 128>}, {transform_indices = @transform_1, window_bounds = array<i64: 8, 128>}, {pipeline_mode = #tpu.pipeline_mode<synchronous>, transform_indices = @transform_2, window_bounds = array<i64: 128, 128>}, {pipeline_mode = #tpu.pipeline_mode<synchronous>, transform_indices = @transform_3, window_bounds = array<i64: 1, 128>}, {pipeline_mode = #tpu.pipeline_mode<synchronous>, transform_indices = @transform_4, window_bounds = array<i64: 128, 128>}, {pipeline_mode = #tpu.pipeline_mode<synchronous>, transform_indices = @transform_5, window_bounds = array<i64: 128, 128>}, {pipeline_mode = #tpu.pipeline_mode<synchronous>, transform_indices = @transform_6, window_bounds = array<i64: 8, 128>}, {transform_indices = @transform_7, window_bounds = array<i64: 1, 128, 128>}, {transform_indices = @transform_8, window_bounds = array<i64: 8, 128>}]} {
    %0 = arith.index_cast %arg1 : i32 to index
    %c0 = arith.constant 0 : index
    %1 = vector.load %arg8[%0, %c0] : memref<8x128xf32, #tpu.memory_space<vmem>>, vector<1x128xf32>
    %c0_i32 = arith.constant 0 : i32
    %2 = arith.cmpi eq, %arg1, %c0_i32 : i32
    %3 = arith.extui %2 : i1 to i32
    %c0_i32_0 = arith.constant 0 : i32
    %4 = arith.cmpi ne, %3, %c0_i32_0 : i32
    scf.if %4 {
      %c0_4 = arith.constant 0 : index
      %c0_5 = arith.constant 0 : index
      %11 = vector.load %arg2[%c0_4, %c0_5] : memref<8x128xf32, #tpu.memory_space<vmem>>, vector<8x128xf32>
      %12 = arith.mulf %11, %11 : vector<8x128xf32>
      %cst = arith.constant dense<0.000000e+00> : vector<8xf32>
      %13 = vector.multi_reduction <add>, %12, %cst [1] : vector<8x128xf32> to vector<8xf32>
      %14 = vector.shape_cast %13 : vector<8xf32> to vector<8x1xf32>
      %cst_6 = arith.constant 3.125000e-02 : f32
      %15 = vector.broadcast %cst_6 : f32 to vector<8x1xf32>
      %16 = arith.mulf %14, %15 : vector<8x1xf32>
      %cst_7 = arith.constant 9.99999993E-9 : f32
      %17 = vector.broadcast %cst_7 : f32 to vector<8x1xf32>
      %18 = arith.addf %16, %17 : vector<8x1xf32>
      %19 = math.rsqrt %18 : vector<8x1xf32>
      %20 = vector.broadcast %19 : vector<8x1xf32> to vector<8x128xf32>
      %21 = arith.mulf %11, %20 : vector<8x128xf32>
      %c0_8 = arith.constant 0 : index
      %c0_9 = arith.constant 0 : index
      %22 = vector.load %arg6[%c0_8, %c0_9] : memref<128x128xf32, #tpu.memory_space<vmem>>, vector<128x128xf32>
      %cst_10 = arith.constant dense<0.000000e+00> : vector<8x128xf32>
      %23 = tpu.matmul %21, %22, %cst_10 {dimension_numbers = #tpu.dot_dimension_numbers<[1], [0], [0], [1], [0, 0, 1, 1], [], []>} : vector<8x128xf32>, vector<128x128xf32>, vector<8x128xf32> -> vector<8x128xf32>
      %c0_11 = arith.constant 0 : index
      %c0_12 = arith.constant 0 : index
      %24 = vector.load %arg3[%c0_11, %c0_12] : memref<8x128xf32, #tpu.memory_space<vmem>>, vector<8x128xf32>
      %c0_13 = arith.constant 0 : index
      %c0_14 = arith.constant 0 : index
      %25 = vector.load %arg4[%c0_13, %c0_14] : memref<128x128xf32, #tpu.memory_space<vmem>>, vector<128x128xf32>
      %cst_15 = arith.constant dense<0.000000e+00> : vector<8x128xf32>
      %26 = tpu.matmul %24, %25, %cst_15 {dimension_numbers = #tpu.dot_dimension_numbers<[1], [0], [0], [1], [0, 0, 1, 1], [], []>} : vector<8x128xf32>, vector<128x128xf32>, vector<8x128xf32> -> vector<8x128xf32>
      %c0_16 = arith.constant 0 : index
      %c0_17 = arith.constant 0 : index
      %27 = vector.load %arg5[%c0_16, %c0_17] : memref<1x128xf32, #tpu.memory_space<vmem>>, vector<1x128xf32>
      %28 = vector.broadcast %27 : vector<1x128xf32> to vector<8x128xf32>
      %29 = arith.addf %26, %28 : vector<8x128xf32>
      %30 = arith.mulf %29, %29 : vector<8x128xf32>
      %cst_18 = arith.constant dense<0.000000e+00> : vector<8xf32>
      %31 = vector.multi_reduction <add>, %30, %cst_18 [1] : vector<8x128xf32> to vector<8xf32>
      %32 = vector.shape_cast %31 : vector<8xf32> to vector<8x1xf32>
      %cst_19 = arith.constant 3.125000e-02 : f32
      %33 = vector.broadcast %cst_19 : f32 to vector<8x1xf32>
      %34 = arith.mulf %32, %33 : vector<8x1xf32>
      %cst_20 = arith.constant 9.99999993E-9 : f32
      %35 = vector.broadcast %cst_20 : f32 to vector<8x1xf32>
      %36 = arith.addf %34, %35 : vector<8x1xf32>
      %37 = math.rsqrt %36 : vector<8x1xf32>
      %38 = vector.broadcast %37 : vector<8x1xf32> to vector<8x128xf32>
      %39 = arith.mulf %29, %38 : vector<8x128xf32>
      %c0_21 = arith.constant 0 : index
      %c0_22 = arith.constant 0 : index
      %40 = vector.load %arg7[%c0_21, %c0_22] : memref<128x128xf32, #tpu.memory_space<vmem>>, vector<128x128xf32>
      %cst_23 = arith.constant dense<0.000000e+00> : vector<8x128xf32>
      %41 = tpu.matmul %39, %40, %cst_23 {dimension_numbers = #tpu.dot_dimension_numbers<[1], [0], [0], [1], [0, 0, 1, 1], [], []>} : vector<8x128xf32>, vector<128x128xf32>, vector<8x128xf32> -> vector<8x128xf32>
      %42 = arith.addf %23, %41 : vector<8x128xf32>
      %43 = vector.broadcast %1 : vector<1x128xf32> to vector<8x128xf32>
      %44 = arith.addf %42, %43 : vector<8x128xf32>
      %cst_24 = arith.constant 0.000000e+00 : f32
      %45 = vector.broadcast %cst_24 : f32 to vector<8x128xf32>
      %46 = arith.cmpf oge, %44, %45 : vector<8x128xf32>
      %cst_25 = arith.constant 2.000000e-01 : f32
      %47 = vector.broadcast %cst_25 : f32 to vector<8x128xf32>
      %48 = arith.mulf %47, %44 : vector<8x128xf32>
      %49 = arith.select %46, %44, %48 : vector<8x128xi1>, vector<8x128xf32>
      %cst_26 = arith.constant 1.41421354 : f32
      %50 = vector.broadcast %cst_26 : f32 to vector<8x128xf32>
      %51 = arith.mulf %49, %50 : vector<8x128xf32>
      %c0_27 = arith.constant 0 : index
      %c0_28 = arith.constant 0 : index
      %52 = vector.load %arg11[%c0_27, %c0_28] : memref<8x128xf32, #tpu.memory_space<vmem>>, vector<8x128xf32>
      tpu.vector_store %arg11[%c0_27, %c0_28], %51 {strides = array<i32>} : memref<8x128xf32, #tpu.memory_space<vmem>>, vector<8x128xf32>,
    } else {
    }
    %c0_i32_1 = arith.constant 0 : i32
    %5 = arith.cmpi sgt, %arg1, %c0_i32_1 : i32
    %6 = arith.extui %5 : i1 to i32
    %c0_i32_2 = arith.constant 0 : i32
    %7 = arith.cmpi ne, %6, %c0_i32_2 : i32
    scf.if %7 {
      %c0_4 = arith.constant 0 : index
      %c0_5 = arith.constant 0 : index
      %11 = vector.load %arg11[%c0_4, %c0_5] : memref<8x128xf32, #tpu.memory_space<vmem>>, vector<8x128xf32>
      %c0_6 = arith.constant 0 : index
      %c0_7 = arith.constant 0 : index
      %c0_8 = arith.constant 0 : index
      %12 = vector.load %arg9[%c0_6, %c0_7, %c0_8] : memref<1x128x128xf32, #tpu.memory_space<vmem>>, vector<1x128x128xf32>
      %13 = vector.shape_cast %12 : vector<1x128x128xf32> to vector<128x128xf32>
      %cst = arith.constant dense<0.000000e+00> : vector<8x128xf32>
      %14 = tpu.matmul %11, %13, %cst {dimension_numbers = #tpu.dot_dimension_numbers<[1], [0], [0], [1], [0, 0, 1, 1], [], []>} : vector<8x128xf32>, vector<128x128xf32>, vector<8x128xf32> -> vector<8x128xf32>
      %15 = vector.broadcast %1 : vector<1x128xf32> to vector<8x128xf32>
      %16 = arith.addf %14, %15 : vector<8x128xf32>
      %cst_9 = arith.constant 0.000000e+00 : f32
      %17 = vector.broadcast %cst_9 : f32 to vector<8x128xf32>
      %18 = arith.cmpf oge, %16, %17 : vector<8x128xf32>
      %cst_10 = arith.constant 2.000000e-01 : f32
      %19 = vector.broadcast %cst_10 : f32 to vector<8x128xf32>
      %20 = arith.mulf %19, %16 : vector<8x128xf32>
      %21 = arith.select %18, %16, %20 : vector<8x128xi1>, vector<8x128xf32>
      %cst_11 = arith.constant 1.41421354 : f32
      %22 = vector.broadcast %cst_11 : f32 to vector<8x128xf32>
      %23 = arith.mulf %21, %22 : vector<8x128xf32>
      %c0_12 = arith.constant 0 : index
      %c0_13 = arith.constant 0 : index
      %24 = vector.load %arg11[%c0_12, %c0_13] : memref<8x128xf32, #tpu.memory_space<vmem>>, vector<8x128xf32>
      tpu.vector_store %arg11[%c0_12, %c0_13], %23 {strides = array<i32>} : memref<8x128xf32, #tpu.memory_space<vmem>>, vector<8x128xf32>,
    } else {
    }
    %c7_i32 = arith.constant 7 : i32
    %8 = arith.cmpi eq, %arg1, %c7_i32 : i32
    %9 = arith.extui %8 : i1 to i32
    %c0_i32_3 = arith.constant 0 : i32
    %10 = arith.cmpi ne, %9, %c0_i32_3 : i32
    scf.if %10 {
      %c0_4 = arith.constant 0 : index
      %c0_5 = arith.constant 0 : index
      %11 = vector.load %arg11[%c0_4, %c0_5] : memref<8x128xf32, #tpu.memory_space<vmem>>, vector<8x128xf32>
      %c0_6 = arith.constant 0 : index
      %c0_7 = arith.constant 0 : index
      %12 = vector.load %arg10[%c0_6, %c0_7] : memref<8x128xf32, #tpu.memory_space<vmem>>, vector<8x128xf32>
      tpu.vector_store %arg10[%c0_6, %c0_7], %11 {strides = array<i32>} : memref<8x128xf32, #tpu.memory_space<vmem>>, vector<8x128xf32>,
    } else {
    }
    return
  }
  func.func @transform_0(%arg0: i32, %arg1: i32) -> (i32, i32) {
    %c0_i32 = arith.constant 0 : i32
    %c0_i32_0 = arith.constant 0 : i32
    return %arg0, %c0_i32 : i32, i32
  }
  func.func @transform_1(%arg0: i32, %arg1: i32) -> (i32, i32) {
    %c0_i32 = arith.constant 0 : i32
    %c0_i32_0 = arith.constant 0 : i32
    return %arg0, %c0_i32 : i32, i32
  }
  func.func @transform_2(%arg0: i32, %arg1: i32) -> (i32, i32) {
    %c0_i32 = arith.constant 0 : i32
    %c0_i32_0 = arith.constant 0 : i32
    %c0_i32_1 = arith.constant 0 : i32
    return %c0_i32, %c0_i32_0 : i32, i32
  }
  func.func @transform_3(%arg0: i32, %arg1: i32) -> (i32, i32) {
    %c0_i32 = arith.constant 0 : i32
    %c0_i32_0 = arith.constant 0 : i32
    %c0_i32_1 = arith.constant 0 : i32
    return %c0_i32, %c0_i32_0 : i32, i32
  }
  func.func @transform_4(%arg0: i32, %arg1: i32) -> (i32, i32) {
    %c0_i32 = arith.constant 0 : i32
    %c0_i32_0 = arith.constant 0 : i32
    %c0_i32_1 = arith.constant 0 : i32
    return %c0_i32, %c0_i32_0 : i32, i32
  }
  func.func @transform_5(%arg0: i32, %arg1: i32) -> (i32, i32) {
    %c0_i32 = arith.constant 0 : i32
    %c0_i32_0 = arith.constant 0 : i32
    %c0_i32_1 = arith.constant 0 : i32
    return %c0_i32, %c0_i32_0 : i32, i32
  }
  func.func @transform_6(%arg0: i32, %arg1: i32) -> (i32, i32) {
    %c0_i32 = arith.constant 0 : i32
    %c0_i32_0 = arith.constant 0 : i32
    %c0_i32_1 = arith.constant 0 : i32
    return %c0_i32, %c0_i32_0 : i32, i32
  }
  func.func @transform_7(%arg0: i32, %arg1: i32) -> (i32, i32, i32) {
    %c1_i32 = arith.constant 1 : i32
    %0 = arith.subi %arg1, %c1_i32 : i32
    %c0_i32 = arith.constant 0 : i32
    %1 = arith.maxsi %0, %c0_i32 : i32
    %c0_i32_0 = arith.constant 0 : i32
    %c0_i32_1 = arith.constant 0 : i32
    %c0_i32_2 = arith.constant 0 : i32
    return %1, %c0_i32_0, %c0_i32_1 : i32, i32, i32
  }
  func.func @transform_8(%arg0: i32, %arg1: i32) -> (i32, i32) {
    %c0_i32 = arith.constant 0 : i32
    %c0_i32_0 = arith.constant 0 : i32
    return %arg0, %c0_i32 : i32, i32
  }
}

</mosaic_0001>

<bundles_post_ra>
// kernel: tpu_custom_call.1
= control target key start
LH: loop header
LB: loop body
LE: loop exit
PB: predicated region body
PF: predicated region fallthrough
CT: control target
= control target key end

     0   :  { %s1523_s0 = inlined_call_operand.hbm [shape: f32[8,128], index: 0, kind: input, shape index: {}]   ;;  %s1524_s1 = inlined_call_operand.hbm [shape: f32[8,128], index: 1, kind: input, shape index: {}]   ;;  %s1525_s2 = inlined_call_operand.hbm [shape: f32[128,128], index: 2, kind: input, shape index: {}]   ;;  %s1526_s3 = inlined_call_operand.vmem [shape: f32[1,128], index: 3, kind: input, shape index: {}]   ;;  %s1527_s4 = inlined_call_operand.hbm [shape: f32[128,128], index: 4, kind: input, shape index: {}]   ;;  %s1528_s5 = inlined_call_operand.hbm [shape: f32[128,128], index: 5, kind: input, shape index: {}]   ;;  %s1529_s6 = inlined_call_operand.hbm [shape: f32[8,128], index: 6, kind: input, shape index: {}]   ;;  %s1530_s7 = inlined_call_operand.hbm [shape: f32[7,128,128], index: 7, kind: input, shape index: {}]   ;;  %s1531_s8 = inlined_call_operand.hbm [shape: f32[8,128], index: 8, kind: output, shape index: {}]  }
   0x1   :  { %1534 = sst [smem:[#allocation22_spill]] %s1523_s0 }
   0x2   :  { %1535 = sst [smem:[#allocation23_spill]] %s1524_s1 }
   0x3   :  { %1536 = sst [smem:[#allocation24_spill]] %s1525_s2 }
   0x4   :  { %1537 = sst [smem:[#allocation25_spill]] %s1527_s4 }
   0x5   :  { %13 = vsyncpa [#allocation4], 0 }
   0x6   :  { %14 = vsyncpa [#allocation7], 0 }
   0x7   :  { %15 = vsyncpa [#allocation10], 0 }
   0x8   :  { %16 = vsyncpa [#allocation13], 0 }
   0x9   :  { %17 = vsyncpa [#allocation5], 0  ;;  %s1319_s27 = smov 0   ;;  %s1321_s28 = smov 0  }
   0xa   :  { %s1323_s29 = smov 0   ;;  %s1325_s30 = smov 0  }
   0xb   :  { %s1327_s9 = smov 0   ;;  %s1329_s10 = smov 0  }
   0xc LB: > { %s1350_s11 = sadd.s32 4294967295, %s1263_s10   ;;  %p797_p0 = scmp.ge.s32.totalorder %s1263_s10, 1  ;;  %s1263_s10 = sphi %s1329_s10, %s23_s10   ;;  %s1259_s9 = sphi %s1327_s9, %s1552_s9   ;;  %s1255_s30 = sphi %s1325_s30, %s1551_s30   ;;  %s1251_s29 = sphi %s1323_s29, %s1550_s29   ;;  %s1247_s28 = sphi %s1321_s28, %s1549_s28   ;;  %s1243_s27 = sphi %s1319_s27, %s1548_s27  }
   0xd   : > { %p219_p1 = scmp.eq.s32.totalorder %s1350_s11, 0  ;;  %p255_p2 = scmp.lt.s32.totalorder %s1263_s10, 9 }
   0xe   : > { %s1538_s0 = sld [smem:[#allocation22_spill]]  ;;  %s1265_s16 = smov [#allocation3]  }
   0xf   : > { %p1358_p3 = pnand %p797_p0, %p255_p2  ;;  %s271_s17 = sshll.u32 %s1265_s16, 4  ;;  %s272_s17 = int_to_ptr.vmem [resolvable:$true] %s271_s17 }
  0x10   : > { %s1540_s1 = sld [smem:[#allocation23_spill]]  ;;  %s1266_s22 = smov [#allocation6]  }
  0x11   : > { %p855_p4 = pneg %p1358_p3  ;;  %s285_s23 = sshll.u32 %s1266_s22, 4  ;;  %s286_s23 = int_to_ptr.vmem [resolvable:$true] %s285_s23 }
  0x12   : > { %s1542_s4 = sld [smem:[#allocation25_spill]]  ;;  %s1267_s12 = smov [#allocation9]  }
  0x13   : > { %p1369_p5 = pnand %p855_p4, %p219_p1  ;;  %s313_s13 = sshll.u32 %s1267_s12, 4  ;;  %s314_s13 = int_to_ptr.vmem [resolvable:$true] %s313_s13 }
  0x14   : > { %s269_s14 = sshll.u32 %s1538_s0, 4  ;;  %s1543_s2 = sld [smem:[#allocation24_spill]]  ;;  %s270_s14 = int_to_ptr.hbm [resolvable:$true] %s269_s14 }
  0x15   : > { %858 = dma.hbm_to_vmem [thread:$0]  (!%p1369_p5), %s270_s14, 128, %s272_s17, [#allocation4]  }
  0x16   : > { %s283_s20 = sshll.u32 %s1540_s1, 4  ;;  %s1532_s22 = smov 128   ;;  %s284_s20 = int_to_ptr.hbm [resolvable:$true] %s283_s20 }
  0x17   : > { %861 = dma.hbm_to_vmem [thread:$0]  (!%p1369_p5), %s284_s20, 128, %s286_s23, [#allocation7]  }
  0x18   : > { %s311_s26 = sshll.u32 %s1542_s4, 4  ;;  %s1533_s0 = smov 8   ;;  %s312_s26 = int_to_ptr.hbm [resolvable:$true] %s311_s26 }
  0x19   : > { %867 = dma.hbm_to_vmem [thread:$0]  (!%p1369_p5), %s312_s26, 2048, %s314_s13, [#allocation10], %s1532_s22, %s1532_s22, %s1533_s0  }
  0x1a   : > { %s294_s19 = sshll.u32 %s1543_s2, 4  ;;  %s1270_s14 = smov [#allocation8]   ;;  %s295_s19 = int_to_ptr.hbm [resolvable:$true] %s294_s19 }
  0x1b   : > { %s296_s17 = sshll.u32 %s1270_s14, 4  ;;  %s325_s24 = sshll.u32 %s1528_s5, 4  ;;  %s297_s17 = int_to_ptr.vmem [resolvable:$true] %s296_s17  ;;  %s326_s24 = int_to_ptr.hbm [resolvable:$true] %s325_s24 }
  0x1c   : > { %864 = dma.hbm_to_vmem [thread:$0]  (!%p1369_p5), %s295_s19, 2048, %s297_s17, [#allocation7], %s1532_s22, %s1532_s22, %s1533_s0  }
  0x1d   : > { %s340_s12 = sshll.u32 %s1529_s6, 4  ;;  %s1271_s13 = smov [#allocation11]   ;;  %s341_s12 = int_to_ptr.hbm [resolvable:$true] %s340_s12 }
  0x1e   : > { %s327_s16 = sshll.u32 %s1271_s13, 4  ;;  %s1272_s18 = smov [#allocation12]   ;;  %s328_s16 = int_to_ptr.vmem [resolvable:$true] %s327_s16 }
  0x1f   : > { %870 = dma.hbm_to_vmem [thread:$0]  (!%p1369_p5), %s326_s24, 2048, %s328_s16, [#allocation10], %s1532_s22, %s1532_s22, %s1533_s0  }
  0x20   : > { %s342_s14 = sshll.u32 %s1272_s18, 4  ;;  %s32_s19 = sadd.s32 1, %s1259_s9  ;;  %s343_s14 = int_to_ptr.vmem [resolvable:$true] %s342_s14 }
  0x21   : > { %873 = dma.hbm_to_vmem [thread:$0]  (!%p1369_p5), %s341_s12, 128, %s343_s14, [#allocation13]  }
  0x22   : > { %s795_s17 = sadd.s32 4294967295, %s1259_s9  ;;  %p33_p6 = scmp.ge.s32.totalorder %s32_s19, 8 }
  0x23   : > { %p197_p7 = scmp.gt.s32.totalorder %s795_s17, 0  ;;  %p212_p8 = scmp.ne.s32.totalorder %s1251_s29, %s1247_s28 }
  0x24   : > { %s1554_s19 = smov (%p33_p6, %s32_s19), 0  ;;  %p213_p9 = scmp.eq.s32.totalorder %s1263_s10, 0 }
  0x25   : > { %s1556_s17 = smov (!%p197_p7, %s795_s17), 0  ;;  %s796_s20 = sadd.s32 4294967295, %s1554_s19 }
  0x26   : > { %p200_p10 = scmp.gt.s32.totalorder %s796_s20, 0  ;;  %p218_p11 = scmp.ne.s32.totalorder %s1247_s28, %s1243_s27 }
  0x27   : > { %s205_s21 = sadd.s32 1, %s1251_s29  ;;  %p1417_p12 = por %p213_p9, %p212_p8 }
  0x28   : > { %s1558_s20 = smov (!%p200_p10, %s796_s20), 0  ;;  %p1423_p13 = por %p219_p1, %p218_p11 }
  0x29   : > { %p884_p0 = scmp.lt.s32.totalorder %s1263_s10, 8  ;;  %s202_s25 = ssub.s32 %s1556_s17, %s1558_s20 }
  0x2a   : > { %s353_s26 = sand.u32 1, %s1263_s10   ;;  %p203_p2 = scmp.eq.s32.totalorder %s202_s25, 0 }
  0x2b   : > { %s355_s12 = sand.u32 1, %s1251_s29   ;;  %s824_s27 = sshll.u32 %s1556_s17, 7 }
  0x2c   : > { %s805_s13 = sshll.u32 %s355_s12, 7  ;;  %s365_s22 = scalar_lea.hbm %s1530_s7, %s824_s27 }
  0x2d   : > { %s1431_s16 = scalar_select %p203_p2, %s1251_s29, %s205_s21  }
  0x2e   : > { %s366_s0 = sshll.u32 %s365_s22, 4  ;;  %s357_s1 = scalar_lea.vmem [#allocation14], %s805_s13  ;;  %s367_s0 = int_to_ptr.hbm [resolvable:$true] %s366_s0 }
  0x2f   : > { %s368_s2 = sshll.u32 %s357_s1, 4  ;;  %p875_p4 = pnand %p884_p0, %p1417_p12  ;;  %s369_s2 = int_to_ptr.vmem [resolvable:$true] %s368_s2 }
  0x30   : > { %s354_s20 = scalar_lea.sflag [#allocation4], %s353_s26  ;;  %s1546_s4 = smov 8  }
  0x31   : > { %s1547_s25 = smov 128   ;;  %380 = sbr.rel (%p1358_p3) target bundleno = 698 (0x2ba), region = 52 }
  0x32   : > { %877 = dma.hbm_to_vmem [thread:$0]  (!%p875_p4), %s367_s0, 2048, %s369_s2, %s354_s20, %s1547_s25, %s1547_s25, %s1546_s4  }
  0x36   : > { %1218 = dma.done.wait (%p219_p1), [#allocation4], 128  }
  0x37   : > { %1220 = vsyncadd (%p219_p1), [#allocation4], 4294967168 }
  0x38   : > { %1222 = dma.done.wait (%p219_p1), [#allocation7], 2176  }
  0x39   : > { %1224 = vsyncadd (%p219_p1), [#allocation7], 4294965120 }
  0x3a   : > { %1226 = dma.done.wait (%p219_p1), [#allocation10], 4096  }
  0x3b   : > { %1228 = vsyncadd (%p219_p1), [#allocation10], 4294963200 }
  0x3c   : > { %1230 = dma.done.wait (%p219_p1), [#allocation13], 128  }
  0x3d   : > { %1232 = vsyncadd (%p219_p1), [#allocation13], 4294967168  ;;  %s412_s0 = sand.u32 1, %s1350_s11   ;;  %s414_s1 = sand.u32 1, %s1247_s28  }
  0x3e   : > { %s816_s2 = sshll.u32 %s414_s1, 7  ;;  %s413_s4 = scalar_lea.sflag [#allocation4], %s412_s0 }
  0x3f   : > { %s1463_s15 = scalar_lea.vmem [#allocation14], %s816_s2 }
  0x40   : > { %1234 = dma.done.wait (%p1423_p13), %s413_s4, 2048  }
  0x41   : > { %1236 = vsyncadd (%p1423_p13), %s413_s4, 4294965248  ;;  %s448_s22 = scalar_lea.vmem [#allocation12], %s1255_s30  ;;  %p817_p1 = scmp.ne.s32.totalorder %s1255_s30, 0 }
  0x42   : > { %v1470_v0 = vld [vmem:[%s448_s22] sm:$0x1] }
  0x43   : > { %453 = sbr.rel (%p817_p1) target bundleno = 510 (0x1fe), region = 84 }
  0x48   : > { %v503_v1 = vld [vmem:[#allocation8 + $0x78] sm:$0xff]  ;;  %v502_v2 = vld [vmem:[#allocation8 + $0x70] sm:$0xff]  ;;  %v501_v3 = vld [vmem:[#allocation8 + $0x68] sm:$0xff] }
  0x49   : > { %508 = vmatpush.msra.mxu0 %v503_v1  ;;  %v500_v4 = vld [vmem:[#allocation8 + $0x60] sm:$0xff]  ;;  %v1473_v5 = vld [vmem:[#allocation3] sm:$0xff]  ;;  %v499_v6 = vld [vmem:[#allocation8 + $0x58] sm:$0xff] }
  0x4a   : > { %v455_v7 = vmul.f32 %v1473_v5, %v1473_v5  ;;  %v498_v8 = vld [vmem:[#allocation8 + $0x50] sm:$0xff]  ;;  %v497_v9 = vld [vmem:[#allocation8 + $0x48] sm:$0xff]  ;;  %v496_v10 = vld [vmem:[#allocation8 + $0x40] sm:$0xff] }
  0x4b   : > { %509 = vmatpush.msra.mxu0 %v502_v2  ;;  %v495_v11 = vld [vmem:[#allocation8 + $0x38] sm:$0xff]  ;;  %v494_v12 = vld [vmem:[#allocation8 + $0x30] sm:$0xff]  ;;  %v493_v13 = vld [vmem:[#allocation8 + $0x28] sm:$0xff] }
  0x4c   : > { %456 = vadd.xlane.f32.xlu0 %v455_v7  ;;  %v492_v14 = vld [vmem:[#allocation8 + $0x20] sm:$0xff]  ;;  %v491_v15 = vld [vmem:[#allocation8 + $0x18] sm:$0xff]  ;;  %v490_v16 = vld [vmem:[#allocation8 + $0x10] sm:$0xff] }
  0x4d   : > { %510 = vmatpush.msra.mxu0 %v501_v3  ;;  %v489_v17 = vld [vmem:[#allocation8 + $0x8] sm:$0xff]  ;;  %v488_v18 = vld [vmem:[#allocation8] sm:$0xff]  ;;  %v487_v19 = vld [vmem:[#allocation6] sm:$0xff] }
  0x4e   : > { %v486_v20 = vld [vmem:[#allocation9 + $0x78] sm:$0xff]  ;;  %v485_v21 = vld [vmem:[#allocation9 + $0x70] sm:$0xff]  ;;  %v484_v22 = vld [vmem:[#allocation9 + $0x68] sm:$0xff] }
  0x4f   : > { %511 = vmatpush.msra.mxu0 %v500_v4  ;;  %580 = vmatpush.msra.mxu2 %v486_v20  ;;  %v483_v23 = vld [vmem:[#allocation9 + $0x60] sm:$0xff]  ;;  %v559_v24 = vld [vmem:[#allocation11 + $0x78] sm:$0xff]  ;;  %v558_v25 = vld [vmem:[#allocation11 + $0x70] sm:$0xff] }
  0x50   : > { %560 = vmatpush.msra.mxu1 %v559_v24  ;;  %v482_v26 = vld [vmem:[#allocation9 + $0x58] sm:$0xff]  ;;  %v557_v27 = vld [vmem:[#allocation11 + $0x68] sm:$0xff]  ;;  %v481_v28 = vld [vmem:[#allocation9 + $0x50] sm:$0xff] }
  0x51   : > { %512 = vmatpush.msra.mxu0 %v499_v6  ;;  %581 = vmatpush.msra.mxu2 %v485_v21  ;;  %v556_v29 = vld [vmem:[#allocation11 + $0x60] sm:$0xff]  ;;  %v480_v30 = vld [vmem:[#allocation9 + $0x48] sm:$0xff]  ;;  %v478_v32 = vld [vmem:[#allocation9 + $0x38] sm:$0xff] }
  0x52   : > { %561 = vmatpush.msra.mxu1 %v558_v25  ;;  %v479_v31 = vld [vmem:[#allocation9 + $0x40] sm:$0xff]  ;;  %v477_v33 = vld [vmem:[#allocation9 + $0x30] sm:$0xff]  ;;  %v476_v34 = vld [vmem:[#allocation9 + $0x28] sm:$0xff] }
  0x53   : > { %513 = vmatpush.msra.mxu0 %v498_v8  ;;  %582 = vmatpush.msra.mxu2 %v484_v22  ;;  %v475_v35 = vld [vmem:[#allocation9 + $0x20] sm:$0xff]  ;;  %v474_v36 = vld [vmem:[#allocation9 + $0x18] sm:$0xff]  ;;  %v950_v37 = vld [vmem:[%s1526_s3] ss:$0 sm:$0xff] }
  0x54   : > { %562 = vmatpush.msra.mxu1 %v557_v27  ;;  %v473_v38 = vld [vmem:[#allocation9 + $0x10] sm:$0xff]  ;;  %v472_v39 = vld [vmem:[#allocation9 + $0x8] sm:$0xff]  ;;  %v471_v53 = vld [vmem:[#allocation9] sm:$0xff] }
  0x55   : > { %514 = vmatpush.msra.mxu0 %v497_v9  ;;  %583 = vmatpush.msra.mxu2 %v483_v23  ;;  %v555_v55 = vld [vmem:[#allocation11 + $0x58] sm:$0xff]  ;;  %v554_v56 = vld [vmem:[#allocation11 + $0x50] sm:$0xff]  ;;  %v553_v57 = vld [vmem:[#allocation11 + $0x48] sm:$0xff] }
  0x56   : > { %563 = vmatpush.msra.mxu1 %v556_v29  ;;  %v552_v58 = vld [vmem:[#allocation11 + $0x40] sm:$0xff]  ;;  %v551_v59 = vld [vmem:[#allocation11 + $0x38] sm:$0xff]  ;;  %v550_v60 = vld [vmem:[#allocation11 + $0x30] sm:$0xff] }
  0x57   : > { %515 = vmatpush.msra.mxu0 %v496_v10  ;;  %584 = vmatpush.msra.mxu2 %v482_v26  ;;  %v549_v61 = vld [vmem:[#allocation11 + $0x28] sm:$0xff]  ;;  %v548_v62 = vld [vmem:[#allocation11 + $0x20] sm:$0xff]  ;;  %v547_v63 = vld [vmem:[#allocation11 + $0x18] sm:$0xff] }
  0x58   : > { %564 = vmatpush.msra.mxu1 %v555_v55  ;;  %v546_v1 = vld [vmem:[#allocation11 + $0x10] sm:$0xff]  ;;  %v545_v2 = vld [vmem:[#allocation11 + $0x8] sm:$0xff]  ;;  %v544_v3 = vld [vmem:[#allocation11] sm:$0xff] }
  0x59   : > { %516 = vmatpush.msra.mxu0 %v495_v11  ;;  %585 = vmatpush.msra.mxu2 %v481_v28 }
  0x5a   : > { %565 = vmatpush.msra.mxu1 %v554_v56 }
  0x5b   : > { %517 = vmatpush.msra.mxu0 %v494_v12  ;;  %586 = vmatpush.msra.mxu2 %v480_v30 }
  0x5c   : > { %566 = vmatpush.msra.mxu1 %v553_v57 }
  0x5d   : > { %518 = vmatpush.msra.mxu0 %v493_v13  ;;  %587 = vmatpush.msra.mxu2 %v479_v31 }
  0x5e   : > { %567 = vmatpush.msra.mxu1 %v552_v58 }
  0x5f   : > { %519 = vmatpush.msra.mxu0 %v492_v14  ;;  %588 = vmatpush.msra.mxu2 %v478_v32 }
  0x60   : > { %568 = vmatpush.msra.mxu1 %v551_v59 }
  0x61   : > { %520 = vmatpush.msra.mxu0 %v491_v15  ;;  %589 = vmatpush.msra.mxu2 %v477_v33  ;;  %v600_v15 = vperm.slane %v1470_v0, 0 }
  0x62   : > { %569 = vmatpush.msra.mxu1 %v550_v60 }
  0x63   : > { %521 = vmatpush.msra.mxu0 %v490_v16  ;;  %590 = vmatpush.msra.mxu2 %v476_v34 }
  0x64   : > { %570 = vmatpush.msra.mxu1 %v549_v61 }
  0x65   : > { %522 = vmatpush.msra.mxu0 %v489_v17  ;;  %591 = vmatpush.msra.mxu2 %v475_v35 }
  0x66   : > { %571 = vmatpush.msra.mxu1 %v548_v62 }
  0x67   : > { %523 = vmatpush.msra.mxu0 %v488_v18  ;;  %592 = vmatpush.msra.mxu2 %v474_v36 }
  0x68   : > { %524 = vmatmul.f32.vlgmr.msra.gmra.mxu0 %v487_v19  ;;  %572 = vmatpush.msra.mxu1 %v547_v63 }
  0x69   : > { %593 = vmatpush.msra.mxu2 %v473_v38 }
  0x6a   : > { %573 = vmatpush.msra.mxu1 %v546_v1 }
  0x6b   : > { %594 = vmatpush.msra.mxu2 %v472_v39 }
  0x6c   : > { %574 = vmatpush.msra.mxu1 %v545_v2 }
  0x6d   : > { %595 = vmatpush.msra.mxu2 %v471_v53 }
  0x6e   : > { %575 = vmatpush.msra.mxu1 %v544_v3 }
  0xbf   : > { %v457_v43 = vpop.xlane.xlu0 %456 }
  0xc0   : > { %v458_v44 = vmul.f32 0.03125, %v457_v43 }
  0xc2   : > { %v459_v45 = vadd.f32 1e-08, %v458_v44 }
  0xc4   : > { %951 = vrsqrt.f32 %v459_v45  ;;  %vm466_vm0 = vweird.f32 %v459_v45 }
  0xca   : > { %v952_v46 = vpop.eup %951 }
  0xcb   : > { %v461_v47 = vmul.f32 %v952_v46, %v459_v45  ;;  %vm467_vm1 = vweird.f32 %v952_v46 }
  0xcc   : > { %vm468_vm2 = vmor %vm466_vm0, %vm467_vm1 }
  0xcd   : > { %v462_v48 = vmul.f32 %v952_v46, %v461_v47 }
  0xcf   : > { %v463_v49 = vmul.f32 0.5, %v462_v48 }
  0xd1   : > { %v464_v50 = vsub.f32 1.5, %v463_v49 }
  0xd3   : > { %v465_v51 = vmul.f32 %v952_v46, %v464_v50 }
  0xd5   : > { %v469_v52 = vsel %vm468_vm2, %v952_v46, %v465_v51 }
  0xd6   : > { %v470_v54 = vmul.f32 %v469_v52, %v1473_v5 }
  0xd8   : > { %596 = vmatmul.f32.vlgmr.msra.gmra.mxu2 %v470_v54 }
  0xe5   : > { %v525_v40 = vpop.f32.mrf.mxu0 }
  0xe6   : > { %v526_v41 = vadd.f32 %v950_v37, %v525_v40 }
  0xe8   : > { %v528_v42 = vmul.f32 %v526_v41, %v526_v41 }
  0xea   : > { %529 = vadd.xlane.f32.xlu0 %v528_v42 }
 0x15b   : > { %v597_v16 = vpop.f32.mrf.mxu2 }
 0x15d   : > { %v530_v4 = vpop.xlane.xlu0 %529 }
 0x15e   : > { %v531_v5 = vmul.f32 0.03125, %v530_v4 }
 0x160   : > { %v532_v6 = vadd.f32 1e-08, %v531_v5 }
 0x162   : > { %953 = vrsqrt.f32 %v532_v6  ;;  %vm539_vm4 = vweird.f32 %v532_v6 }
 0x168   : > { %v954_v7 = vpop.eup %953 }
 0x169   : > { %v534_v8 = vmul.f32 %v954_v7, %v532_v6  ;;  %vm540_vm3 = vweird.f32 %v954_v7 }
 0x16a   : > { %vm541_vm5 = vmor %vm539_vm4, %vm540_vm3 }
 0x16b   : > { %v535_v9 = vmul.f32 %v954_v7, %v534_v8 }
 0x16d   : > { %v536_v10 = vmul.f32 0.5, %v535_v9 }
 0x16f   : > { %v537_v11 = vsub.f32 1.5, %v536_v10 }
 0x171   : > { %v538_v12 = vmul.f32 %v954_v7, %v537_v11 }
 0x173   : > { %v542_v13 = vsel %vm541_vm5, %v954_v7, %v538_v12 }
 0x174   : > { %v543_v14 = vmul.f32 %v542_v13, %v526_v41 }
 0x176   : > { %576 = vmatmul.f32.vlgmr.msra.gmra.mxu1 %v543_v14 }
 0x1f3   : > { %v577_v17 = vpop.f32.mrf.mxu1 }
 0x1f4   : > { %v598_v18 = vadd.f32 %v597_v16, %v577_v17 }
 0x1f6   : > { %v601_v19 = vadd.f32 %v600_v15, %v598_v18 }
 0x1f8   : > { %vm602_vm6 = vcmp.ge.f32.partialorder %v601_v19, 0.0  ;;  %v603_v20 = vmul.f32 0.2, %v601_v19 }
 0x1fa   : > { %v604_v21 = vsel %vm602_vm6, %v601_v19, %v603_v20 }
 0x1fb   : > { %v605_v22 = vmul.f32 1.4142135, %v604_v21 }
 0x1fd   : > { %606 = vst [vmem:[#allocation2] sm:$0xff] %v605_v22 }
 0x1fe PF: > { %p818_p3 = scmp.le.s32.totalorder %s1255_s30, 0 }
 0x200   : > { %610 = sbr.rel (%p818_p3) target bundleno = 683 (0x2ab), region = 88 }
 0x205   : > { %v627_v23 = vld [vmem:[%s1463_s15 + $0x78] sm:$0xff]  ;;  %v626_v24 = vld [vmem:[%s1463_s15 + $0x70] sm:$0xff]  ;;  %v625_v25 = vld [vmem:[%s1463_s15 + $0x68] sm:$0xff]  ;;  %v628_v40 = vperm.slane %v1470_v0, 0 }
 0x206   : > { %629 = vmatpush.msra.mxu0 %v627_v23  ;;  %v624_v26 = vld [vmem:[%s1463_s15 + $0x60] sm:$0xff]  ;;  %v623_v27 = vld [vmem:[%s1463_s15 + $0x58] sm:$0xff]  ;;  %v622_v28 = vld [vmem:[%s1463_s15 + $0x50] sm:$0xff] }
 0x207   : > { %v621_v29 = vld [vmem:[%s1463_s15 + $0x48] sm:$0xff]  ;;  %v620_v30 = vld [vmem:[%s1463_s15 + $0x40] sm:$0xff]  ;;  %v619_v31 = vld [vmem:[%s1463_s15 + $0x38] sm:$0xff] }
 0x208   : > { %630 = vmatpush.msra.mxu0 %v626_v24  ;;  %v618_v32 = vld [vmem:[%s1463_s15 + $0x30] sm:$0xff]  ;;  %v617_v33 = vld [vmem:[%s1463_s15 + $0x28] sm:$0xff]  ;;  %v616_v34 = vld [vmem:[%s1463_s15 + $0x20] sm:$0xff] }
 0x209   : > { %v615_v35 = vld [vmem:[%s1463_s15 + $0x18] sm:$0xff]  ;;  %v614_v36 = vld [vmem:[%s1463_s15 + $0x10] sm:$0xff]  ;;  %v613_v37 = vld [vmem:[%s1463_s15 + $0x8] sm:$0xff] }
 0x20a   : > { %631 = vmatpush.msra.mxu0 %v625_v25  ;;  %v612_v38 = vld [vmem:[%s1463_s15] sm:$0xff] }
 0x20b   : > { %v611_v39 = vld [vmem:[#allocation2] sm:$0xff] }
 0x20c   : > { %632 = vmatpush.msra.mxu0 %v624_v26 }
 0x20e   : > { %633 = vmatpush.msra.mxu0 %v623_v27 }
 0x210   : > { %634 = vmatpush.msra.mxu0 %v622_v28 }
 0x212   : > { %635 = vmatpush.msra.mxu0 %v621_v29 }
 0x214   : > { %636 = vmatpush.msra.mxu0 %v620_v30 }
 0x216   : > { %637 = vmatpush.msra.mxu0 %v619_v31 }
 0x218   : > { %638 = vmatpush.msra.mxu0 %v618_v32 }
 0x21a   : > { %639 = vmatpush.msra.mxu0 %v617_v33 }
 0x21c   : > { %640 = vmatpush.msra.mxu0 %v616_v34 }
 0x21e   : > { %641 = vmatpush.msra.mxu0 %v615_v35 }
 0x220   : > { %642 = vmatpush.msra.mxu0 %v614_v36 }
 0x222   : > { %643 = vmatpush.msra.mxu0 %v613_v37 }
 0x224   : > { %644 = vmatpush.msra.mxu0 %v612_v38 }
 0x225   : > { %645 = vmatmul.f32.vlgmr.msra.gmra.mxu0 %v611_v39 }
 0x2a2   : > { %v646_v41 = vpop.f32.mrf.mxu0 }
 0x2a3   : > { %v647_v42 = vadd.f32 %v646_v41, %v628_v40 }
 0x2a5   : > { %vm649_vm7 = vcmp.ge.f32.partialorder %v647_v42, 0.0  ;;  %v650_v43 = vmul.f32 0.2, %v647_v42 }
 0x2a7   : > { %v651_v44 = vsel %vm649_vm7, %v647_v42, %v650_v43 }
 0x2a8   : > { %v652_v45 = vmul.f32 1.4142135, %v651_v44 }
 0x2aa   : > { %653 = vst [vmem:[#allocation2] sm:$0xff] %v652_v45 }
 0x2ab PF: > { %p819_p5 = scmp.ne.s32.totalorder %s1255_s30, 7 }
 0x2ad   : > { %657 = sbr.rel (%p819_p5) target bundleno = 692 (0x2b4), region = 92 }
 0x2b2   : > { %v658_v46 = vld [vmem:[#allocation2] sm:$0xff] }
 0x2b3   : > { %659 = vst [vmem:[#allocation15] sm:$0xff] %v658_v46 }
 0x2b4 PF: > { %p891_p6 = scmp.eq.s32.totalorder %s1350_s11, 7  ;;  %s670_s26 = sshll.u32 %s1531_s8, 4  ;;  %s671_s26 = int_to_ptr.hbm [resolvable:$true] %s670_s26 }
 0x2b5   : > { %s1273_s12 = smov [#allocation15]  }
 0x2b6   : > { %s668_s13 = sshll.u32 %s1273_s12, 4  ;;  %s669_s13 = int_to_ptr.vmem [resolvable:$true] %s668_s13 }
 0x2b7   : > { %852 = dma.vmem_to_hbm [thread:$0]  (%p891_p6), %s669_s13, 128, %s671_s26, [#allocation5]  }
 0x2b8   : > { %1238 = dma.done.wait (%p891_p6), [#allocation5], 128  }
 0x2b9   : > { %1240 = vsyncadd (%p891_p6), [#allocation5], 4294967168 }
 0x2ba PF: > { %s23_s10 = sadd.s32 1, %s1263_s10   ;;  %s1548_s27 = smov %s1247_s28 }
 0x2bb   : > { %p20_p7 = scmp.ge.s32.totalorder %s23_s10, 10   ;;  %s1549_s28 = smov %s1251_s29 }
 0x2bc   : > { %s1550_s29 = smov %s1431_s16  ;;  %s1551_s30 = smov %s1259_s9 }
 0x2bd   : > { %s1552_s9 = smov %s1554_s19  ;;  %22 = sbr.rel (!%p20_p7) target bundleno = 12 (0xc), region = 128 }
 0x2c2   :  { %684 = vsyncpa [#allocation4], 1 }
 0x2c3   :  { %686 = vsyncpa [#allocation4 + $0x1], 1 }
 0x2c4   :  { %687 = vsyncpa [#allocation7], 1 }
 0x2c5   :  { %688 = vsyncpa [#allocation10], 1 }
 0x2c6   :  { %689 = vsyncpa [#allocation13], 1 }
 0x2c7   :  { %690 = vsyncpa [#allocation5], 1 }
 0x2c8   :  { %692 = vsyncpa [#allocation5 + $0x1], 1 }

</bundles_post_ra>
